<compile_context>
chip_gen: v5e
topology: v5e:2x2
jax: 0.10.0
libtpu: 0.0.40
codegen_flags: <defaults>
</compile_context>

<pallas_src>
import jax
import jax.numpy as jnp
from jax.experimental import pallas as pl
from jax.experimental.pallas import tpu as pltpu


def _rmsnorm_kernel(x_ref, g_ref, o_ref):
    # x_ref: (1, C, t_hw) tile; g_ref: (1, C, 1) f32, pre-scaled by sqrt(C).
    x = x_ref[...].astype(jnp.float32)
    g = g_ref[...]
    # Sum of squares over the channel (sublane) axis -> (1, 1, t_hw).
    sumsq = jnp.sum(x * x, axis=1, keepdims=True)
    # max(sqrt(s), 1e-12) == sqrt(max(s, 1e-24)); rsqrt avoids a full-tile divide.
    inv = jax.lax.rsqrt(jnp.maximum(sumsq, jnp.float32(1e-24)))
    o_ref[...] = (x * inv * g).astype(o_ref.dtype)


_TILE_F32_TARGET = 4 << 20   # ~4 MiB of f32 working set per (C, t_hw) tile
_VMEM_LIMIT_CAP = 40 << 20   # well below v7x's 64 MiB physical VMEM


def _choose_spatial_tile(hw, c, n_batch):
    """Lane-axis tile: multiple of 128 (or full extent when it already fits)."""
    bytes_per_col = max(c, 1) * 4                          # f32 working precision
    t = max(128, (_TILE_F32_TARGET // bytes_per_col) // 128 * 128)
    if n_batch < 2 and hw > 256:
        # v7x has 2 TensorCores; keep >= 2 grid steps so both get work.
        t = min(t, max(128, (hw // 2) // 128 * 128))
    if hw <= t:
        return hw          # full extent: always a legal block shape, no ragged block
    return t               # 128-multiple; ragged last block handled by the cdiv grid


def rmsnorm(x_nchw, g):
    """x_nchw: (N, C, H, W); g: (1, C, 1, 1). Returns (N, C, H, W) in x's dtype."""
    N, C, H, W = x_nchw.shape
    HW = H * W

    # Free reshapes only — no HBM transpose passes.
    x3 = x_nchw.reshape(N, C, HW)
    # Fold sqrt(C) into g once; keep in f32 (tiny, resident across the grid).
    g3 = g.reshape(1, C, 1).astype(jnp.float32) * jnp.float32(C ** 0.5)

    t_hw = _choose_spatial_tile(HW, C, N)
    grid = (N, pl.cdiv(HW, t_hw))

    # Explicit VMEM budget: double-buffered in + out tiles, in-kernel f32
    # temporaries, plus headroom; capped well below v7x's 64 MiB physical VMEM.
    io_tile = C * t_hw * x3.dtype.itemsize
    f32_tile = C * t_hw * 4
    vmem_limit = int(min(_VMEM_LIMIT_CAP,
                         max(16 << 20, 4 * io_tile + 4 * f32_tile + (2 << 20))))

    out3 = pl.pallas_call(
        _rmsnorm_kernel,
        out_shape=jax.ShapeDtypeStruct((N, C, HW), x_nchw.dtype),
        grid_spec=pltpu.PrefetchScalarGridSpec(
            num_scalar_prefetch=0,
            grid=grid,
            in_specs=[
                pl.BlockSpec((1, C, t_hw), lambda n, j: (n, 0, j)),  # x tile
                pl.BlockSpec((1, C, 1), lambda n, j: (0, 0, 0)),     # g (broadcast)
            ],
            out_specs=pl.BlockSpec((1, C, t_hw), lambda n, j: (n, 0, j)),
        ),
        compiler_params=pltpu.CompilerParams(
            # Both axes are independent -> shards across v7x's 2 TensorCores.
            dimension_semantics=("parallel", "parallel"),
            vmem_limit_bytes=vmem_limit,
        ),
    )(x3, g3)

    return out3.reshape(N, C, H, W)


def _reference(x_nchw, g):
    x = x_nchw.astype(jnp.float32)
    norm = jnp.sqrt(jnp.sum(x * x, axis=1, keepdims=True))
    denom = jnp.maximum(norm, 1e-12)
    C = x_nchw.shape[1]
    return ((x / denom) * g.astype(jnp.float32) * (C ** 0.5)).astype(x_nchw.dtype)


if __name__ == "__main__":
    # Primary small shape implied by the module: batch=2, channels=4, spatial=16.
    N, C, H, W = 2, 4, 16, 16
    x = jax.random.normal(jax.random.PRNGKey(0), (N, C, H, W), dtype=jnp.float32)
    # Deterministic parameter init, same as nn.Parameter(torch.ones(1, dim, 1, 1)).
    g = jnp.ones((1, C, 1, 1), dtype=jnp.float32)

    y = rmsnorm(x, g)
    jax.block_until_ready(y)
    assert y.shape == (N, C, H, W)
    assert jnp.allclose(y, _reference(x, g), atol=1e-5, rtol=1e-5)

    # Also exercise the ragged lane-tile + N==1 megacore-split path at small size:
    # HW = 24*24 = 576 -> t_hw = 256, grid = (1, 3), last block ragged (masked store).
    x2 = jax.random.normal(jax.random.PRNGKey(1), (1, 8, 24, 24), dtype=jnp.float32)
    g2 = jax.random.normal(jax.random.PRNGKey(2), (1, 8, 1, 1), dtype=jnp.float32)
    y2 = rmsnorm(x2, g2)
    jax.block_until_ready(y2)
    assert jnp.allclose(y2, _reference(x2, g2), atol=1e-5, rtol=1e-5)

    print("KERNEL_OK")
</pallas_src>

<mosaic_0001>
module attributes {stable_mosaic.version = 11 : i64} {
  func.func @_rmsnorm_kernel(%arg0: i32, %arg1: i32, %arg2: memref<1x4x256xf32, #tpu.memory_space<vmem>>, %arg3: memref<1x4x1xf32, #tpu.memory_space<vmem>>, %arg4: memref<1x4x256xf32, #tpu.memory_space<vmem>>) attributes {dimension_semantics = [#tpu.dimension_semantics<parallel>, #tpu.dimension_semantics<parallel>], iteration_bounds = array<i64: 2, 1>, scalar_prefetch = 0 : i64, scratch_operands = 0 : i64, tpu.core_type = #tpu.core_type<tc>, window_params = [{transform_indices = @transform_0, window_bounds = array<i64: 1, 4, 256>}, {pipeline_mode = #tpu.pipeline_mode<synchronous>, transform_indices = @transform_1, window_bounds = array<i64: 1, 4, 1>}, {transform_indices = @transform_2, window_bounds = array<i64: 1, 4, 256>}]} {
    %c0 = arith.constant 0 : index
    %c0_0 = arith.constant 0 : index
    %c0_1 = arith.constant 0 : index
    %0 = vector.load %arg2[%c0, %c0_0, %c0_1] : memref<1x4x256xf32, #tpu.memory_space<vmem>>, vector<1x4x256xf32>
    %c0_2 = arith.constant 0 : index
    %c0_3 = arith.constant 0 : index
    %c0_4 = arith.constant 0 : index
    %1 = vector.load %arg3[%c0_2, %c0_3, %c0_4] : memref<1x4x1xf32, #tpu.memory_space<vmem>>, vector<1x4x1xf32>
    %2 = arith.mulf %0, %0 : vector<1x4x256xf32>
    %cst = arith.constant dense<0.000000e+00> : vector<1x256xf32>
    %3 = vector.multi_reduction <add>, %2, %cst [1] : vector<1x4x256xf32> to vector<1x256xf32>
    %4 = vector.shape_cast %3 : vector<1x256xf32> to vector<1x1x256xf32>
    %cst_5 = arith.constant 1.000000e-24 : f32
    %5 = vector.broadcast %cst_5 : f32 to vector<1x1x256xf32>
    %6 = arith.maximumf %4, %5 : vector<1x1x256xf32>
    %7 = math.rsqrt %6 : vector<1x1x256xf32>
    %8 = vector.broadcast %7 : vector<1x1x256xf32> to vector<1x4x256xf32>
    %9 = arith.mulf %0, %8 : vector<1x4x256xf32>
    %10 = vector.broadcast %1 : vector<1x4x1xf32> to vector<1x4x256xf32>
    %11 = arith.mulf %9, %10 : vector<1x4x256xf32>
    %c0_6 = arith.constant 0 : index
    %c0_7 = arith.constant 0 : index
    %c0_8 = arith.constant 0 : index
    %12 = vector.load %arg4[%c0_6, %c0_7, %c0_8] : memref<1x4x256xf32, #tpu.memory_space<vmem>>, vector<1x4x256xf32>
    tpu.vector_store %arg4[%c0_6, %c0_7, %c0_8], %11 {strides = array<i32>} : memref<1x4x256xf32, #tpu.memory_space<vmem>>, vector<1x4x256xf32>,
    return
  }
  func.func @transform_0(%arg0: i32, %arg1: i32) -> (i32, i32, i32) {
    %c0_i32 = arith.constant 0 : i32
    %c0_i32_0 = arith.constant 0 : i32
    return %arg0, %c0_i32, %arg1 : i32, i32, i32
  }
  func.func @transform_1(%arg0: i32, %arg1: i32) -> (i32, i32, i32) {
    %c0_i32 = arith.constant 0 : i32
    %c0_i32_0 = arith.constant 0 : i32
    %c0_i32_1 = arith.constant 0 : i32
    %c0_i32_2 = arith.constant 0 : i32
    return %c0_i32, %c0_i32_0, %c0_i32_1 : i32, i32, i32
  }
  func.func @transform_2(%arg0: i32, %arg1: i32) -> (i32, i32, i32) {
    %c0_i32 = arith.constant 0 : i32
    %c0_i32_0 = arith.constant 0 : i32
    return %arg0, %c0_i32, %arg1 : i32, i32, i32
  }
}

</mosaic_0001>

<bundles_post_ra>
// kernel: tpu_custom_call.1
= control target key start
LH: loop header
LB: loop body
LE: loop exit
PB: predicated region body
PF: predicated region fallthrough
CT: control target
= control target key end

     0   :  { %7 = vsyncpa [#allocation3], 0  ;;  %s695_s0 = inlined_call_operand.hbm [shape: f32[2,4,256], index: 0, kind: input, shape index: {}]   ;;  %s696_s1 = inlined_call_operand.vmem [shape: f32[1,4,1], index: 1, kind: input, shape index: {}]   ;;  %s697_s2 = inlined_call_operand.hbm [shape: f32[2,4,256], index: 2, kind: output, shape index: {}]  }
   0x1   :  { %9 = vsyncpa [#allocation3 + $0x1], 0 }
   0x2   :  { %10 = vsyncpa [#allocation4], 0 }
   0x3   :  { %12 = vsyncpa [#allocation4 + $0x1], 0  ;;  %s565_s9 = smov 0   ;;  %s567_s10 = smov 0  }
   0x4   :  { %s569_s11 = smov 0   ;;  %s571_s12 = smov 0  }
   0x5   :  { %s573_s13 = smov 0   ;;  %s575_s14 = smov 0  }
   0x6 LB: > { %s348_s15 = sadd.s32 4294967295, %s546_s14   ;;  %s349_s16 = sadd.s32 4294967294, %s546_s14   ;;  %s546_s14 = sphi %s575_s14, %s18_s14   ;;  %s542_s13 = sphi %s573_s13, %s706_s13   ;;  %s538_s12 = sphi %s571_s12, %s705_s12   ;;  %s534_s11 = sphi %s569_s11, %s704_s11   ;;  %s530_s10 = sphi %s567_s10, %s703_s10   ;;  %s526_s9 = sphi %s565_s9, %s702_s9  }
   0x7   : > { %s30_s17 = sadd.s32 1, %s542_s13  ;;  %s39_s18 = sadd.s32 1, %s534_s11 }
   0x8   : > { %p32_p0 = scmp.ge.s32.totalorder %s30_s17, 2  ;;  %p46_p1 = scmp.ne.s32.totalorder %s534_s11, %s530_s10 }
   0x9   : > { %p47_p2 = scmp.eq.s32.totalorder %s546_s14, 0  ;;  %p52_p3 = scmp.ne.s32.totalorder %s530_s10, %s526_s9 }
   0xa   : > { %s708_s17 = smov (%p32_p0, %s30_s17), 0  ;;  %p53_p5 = scmp.eq.s32.totalorder %s348_s15, 0 }
   0xb   : > { %p606_p4 = por %p47_p2, %p46_p1  ;;  %s34_s20 = ssub.s32 %s542_s13, %s708_s17 }
   0xc   : > { %p99_p6 = scmp.eq.s32.totalorder %s348_s15, 1  ;;  %p37_p7 = scmp.eq.s32.totalorder %s34_s20, 0 }
   0xd   : > { %p612_p8 = por %p53_p5, %p52_p3  ;;  %p105_p10 = scmp.eq.s32.totalorder %s349_s16, 1 }
   0xe   : > { %p616_p9 = por %p99_p6, %p46_p1  ;;  %p351_p12 = scmp.ge.s32.totalorder %s546_s14, 2 }
   0xf   : > { %s621_s23 = scalar_select %p37_p7, %s534_s11, %s39_s18  }
  0x10   : > { %p623_p11 = por %p105_p10, %p52_p3  ;;  %p377_p13 = scmp.lt.s32.totalorder %s546_s14, 2 }
  0x11   : > { %s128_s25 = sand.u32 1, %s534_s11   ;;  %s363_s27 = sshll.u32 %s542_s13, 3 }
  0x12   : > { %s352_s26 = sshll.u32 %s128_s25, 3  ;;  %s139_s30 = scalar_lea.hbm %s695_s0, %s363_s27 }
  0x13   : > { %s132_s3 = scalar_lea.vmem [#allocation2], %s352_s26  ;;  %s141_s5 = sshll.u32 %s139_s30, 4  ;;  %s142_s5 = int_to_ptr.hbm [resolvable:$true] %s141_s5 }
  0x14   : > { %s143_s4 = sshll.u32 %s132_s3, 4  ;;  %p370_p0 = pnand %p377_p13, %p606_p4  ;;  %s144_s4 = int_to_ptr.vmem [resolvable:$true] %s143_s4 }
  0x15   : > { %p355_p1 = scmp.ge.s32.totalorder %s546_s14, 1  ;;  %p148_p2 = scmp.lt.s32.totalorder %s546_s14, 3 }
  0x16   : > { %s129_s6 = scalar_lea.sflag [#allocation3], %s128_s25 }
  0x17   : > { %372 = dma.hbm_to_vmem [thread:$0]  (!%p370_p0), %s142_s5, 128, %s144_s4, %s129_s6  }
  0x18   : > { %p149_p3 = pnand %p355_p1, %p148_p2 }
  0x19   : > { %s639_s7 = sand.u32 (!%p149_p3), 1, %s530_s10  }
  0x1a   : > { %152 = sbr.rel (%p149_p3) target bundleno = 156 (0x9c), region = 28  ;;  %s356_s8 = sshll.u32 (!%p149_p3), %s639_s7, 3 }
  0x1b   : > { %s155_s15 = scalar_lea.sflag (!%p149_p3), [#allocation3], %s639_s7  ;;  %s158_s16 = scalar_lea.vmem (!%p149_p3), [#allocation2], %s356_s8 }
  0x1f   : > { %517 = dma.done.wait (%p612_p8), %s155_s15, 128  }
  0x20   : > { %519 = vsyncadd (%p612_p8), %s155_s15, 4294967168  ;;  %v548_v0 = vmov 0   ;;  %v183_v1 = vld [vmem:[%s696_s1] sm:$0xf]  ;;  %v182_v2 = vld [vmem:[%s158_s16] sm:$0xff]  ;;  %vm191_vm0 = vcmask 1043456  }
  0x21   : > { %429 = vset.pattern.permute.xlu0 %v548_v0  ;;  %v184_v3 = vmul.f32 %v182_v2, %v182_v2  ;;  %v549_v36 = vmov 839922192   ;;  %s364_s20 = sshll.u32 %s538_s12, 3  ;;  %s179_s27 = scalar_lea.vmem [#allocation5], %s356_s8 }
  0x22   : > { %236 = vperm.xlu0 %429, %v183_v1   ;;  %v239_v37 = vunpack.c.l.s4 %v549_v36  ;;  %s259_s26 = scalar_lea.hbm %s697_s2, %s364_s20  ;;  %s261_s28 = sshll.u32 %s179_s27, 4  ;;  %s262_s28 = int_to_ptr.vmem [resolvable:$true] %s261_s28 }
  0x23   : > { %186 = vst [vmem:[#allocation1] ss:$2 sm:$0xff] %v184_v3  ;;  %s263_s29 = sshll.u32 %s259_s26, 4  ;;  %s246_s12 = scalar_lea.sflag [#allocation4], %s639_s7  ;;  %s264_s29 = int_to_ptr.hbm [resolvable:$true] %s263_s29 }
  0x24   : > { %v240_v40 = vunpack.c.0.s8 %v239_v37  ;;  %s478_s30 = sshra.s32 %s264_s29, 4  ;;  %s484_s6 = scalar_lea.hbm %s697_s2, 16  ;;  %s479_s30 = int_to_ptr.hbm [resolvable:$true] %s478_s30 }
  0x25   : > { %s480_s3 = scalar_lea.hbm %s479_s30, 8  ;;  %p485_p7 = scmp.lt.s32.totalorder %s479_s30, %s697_s2 }
  0x26   : > { %p481_p4 = scmp.ne.s32.totalorder %s479_s30, %s480_s3  ;;  %p486_p8 = scmp.lt.s32.totalorder %s484_s6, %s480_s3 }
  0x28   : > { %p482_p5 = pnand %p481_p4, %p616_p9  ;;  %p487_p10 = por %p486_p8, %p485_p7 }
  0x2a   : > { %v188_v4 = vld.sshfl [vmem:[#allocation1 + $0x8] sm:$0xff pattern:$0x75316420]  ;;  %v187_v6 = vld.sshfl [vmem:[#allocation1] sm:$0xff pattern:$0x75316420]  ;;  %p483_p6 = pneg %p482_p5 }
  0x2b   : > { %v199_v5 = vsel %vm191_vm0, %v188_v4, 0.0  ;;  %v192_v8 = vsel %vm191_vm0, %v187_v6, 0.0 }
  0x2c   : > { %v200_v7 = vrot.slane %v199_v5, 4  ;;  %v193_v9 = vrot.slane %v192_v8, 4  ;;  %p488_p13 = pnand %p487_p10, %p483_p6 }
  0x2e   : > { %v201_v10 = vadd.f32 %v200_v7, %v199_v5  ;;  %v194_v11 = vadd.f32 %v193_v9, %v192_v8 }
  0x30   : > { %v202_v12 = vrot.slane %v201_v10, 2  ;;  %v195_v13 = vrot.slane %v194_v11, 2 }
  0x32   : > { %v203_v14 = vadd.f32 %v202_v12, %v201_v10  ;;  %v196_v15 = vadd.f32 %v195_v13, %v194_v11 }
  0x34   : > { %v204_v16 = vrot.slane %v203_v14, 1  ;;  %v197_v17 = vrot.slane %v196_v15, 1 }
  0x36   : > { %v205_v18 = vadd.f32 %v204_v16, %v203_v14  ;;  %v198_v19 = vadd.f32 %v197_v17, %v196_v15 }
  0x38   : > { %v207_v20 = vmax.f32 %v205_v18, 1e-24  ;;  %v206_v21 = vmax.f32 %v198_v19, 1e-24 }
  0x3a   : > { %430 = vrsqrt.f32 %v207_v20  ;;  %vm224_vm1 = vweird.f32 %v207_v20  ;;  %vm214_vm4 = vweird.f32 %v206_v21 }
  0x3b   : > { %432 = vrsqrt.f32 %v206_v21 }
  0x40   : > { %v431_v22 = vpop.eup %430 }
  0x41   : > { %v219_v23 = vmul.f32 %v431_v22, %v207_v20  ;;  %v433_v24 = vpop.eup %432  ;;  %vm225_vm2 = vweird.f32 %v431_v22 }
  0x42   : > { %v209_v25 = vmul.f32 %v433_v24, %v206_v21  ;;  %vm226_vm3 = vmor %vm224_vm1, %vm225_vm2  ;;  %vm215_vm5 = vweird.f32 %v433_v24 }
  0x43   : > { %v220_v26 = vmul.f32 %v431_v22, %v219_v23  ;;  %vm216_vm6 = vmor %vm214_vm4, %vm215_vm5 }
  0x44   : > { %v210_v27 = vmul.f32 %v433_v24, %v209_v25 }
  0x45   : > { %v221_v28 = vmul.f32 0.5, %v220_v26 }
  0x46   : > { %v211_v29 = vmul.f32 0.5, %v210_v27 }
  0x47   : > { %v222_v30 = vsub.f32 1.5, %v221_v28 }
  0x48   : > { %v212_v31 = vsub.f32 1.5, %v211_v29 }
  0x49   : > { %v223_v32 = vmul.f32 %v431_v22, %v222_v30 }
  0x4a   : > { %v213_v33 = vmul.f32 %v433_v24, %v212_v31 }
  0x4b   : > { %v227_v34 = vsel %vm226_vm3, %v431_v22, %v223_v32 }
  0x4c   : > { %v230_v35 = vrot.slane %v227_v34, 4  ;;  %v217_v38 = vsel %vm216_vm6, %v433_v24, %v213_v33 }
  0x4e   : > { %v231_v39 = vsel %vm191_vm0, %v217_v38, %v230_v35 }
  0x4f   : > { %v233_v41 = vmul.f32 %v231_v39, %v182_v2 }
  0x94   : > { %v237_v42 = vpop.permute.xlu0 %236 }
  0x95   : > { %v241_v43 = vperm.slane %v237_v42, %v240_v40 }
  0x97   : > { %v243_v44 = vmul.f32 %v241_v43, %v233_v41 }
  0x99   : > { %244 = vst [vmem:[%s179_s27] sm:$0xff] %v243_v44 }
  0x9a   : > { %491 = shalt.err (!%p488_p13)
}
  0x9b   : > { %367 = dma.vmem_to_hbm [thread:$0]  (%p616_p9), %s262_s28, 128, %s264_s29, %s246_s12  }
  0x9c PF: > { %s275_s7 = sand.u32 1, %s526_s9   ;;  %p374_p0 = pnand %p351_p12, %p623_p11 }
  0x9d   : > { %s276_s16 = scalar_lea.sflag [#allocation4], %s275_s7 }
  0x9e   : > { %p375_p1 = pneg %p374_p0 }
  0xa0   : > { %521 = dma.done.wait (%p375_p1), %s276_s16, 128  }
  0xa1   : > { %523 = vsyncadd (%p375_p1), %s276_s16, 4294967168  ;;  %s18_s14 = sadd.s32 1, %s546_s14   ;;  %s702_s9 = smov %s530_s10 }
  0xa2   : > { %p15_p2 = scmp.ge.s32.totalorder %s18_s14, 4   ;;  %s703_s10 = smov %s534_s11 }
  0xa3   : > { %s704_s11 = smov %s621_s23  ;;  %s705_s12 = smov %s542_s13 }
  0xa4   : > { %s706_s13 = smov %s708_s17  ;;  %17 = sbr.rel (!%p15_p2) target bundleno = 6 (0x6), region = 73 }
  0xa9   :  { %282 = vsyncpa [#allocation3], 1 }
  0xaa   :  { %284 = vsyncpa [#allocation3 + $0x1], 1 }
  0xab   :  { %285 = vsyncpa [#allocation4], 1 }
  0xac   :  { %287 = vsyncpa [#allocation4 + $0x1], 1 }

</bundles_post_ra>
